<compile_context>
chip_gen: v7x
topology: tpu7x:2x2x1
jax: 0.10.0
libtpu: 0.0.40
codegen_flags: <defaults>
</compile_context>

<pallas_src>
import jax
import jax.numpy as jnp
from jax.experimental import pallas as pl
from jax.experimental.pallas import tpu as pltpu

# Deterministic "configuration" of the MultiLoss container.
LOSS_WEIGHTS = (1.0, 0.5)      # (MSE weight, L1 weight)
NUM_LOSSES = len(LOSS_WEIGHTS)

LANES = 128
SUBLANES = 8
MAX_BLOCK_ROWS = 2048          # 2048x128 f32 tile = 1 MiB per input per buffer
NUM_SPLITS = 2                 # leading "parallel" axis (v7x has 2 TCs/chip)


def _partial_sums_kernel(x_ref, t_ref, sq_ref, abs_ref):
    """Accumulates per-split (8,128) partial sums of (x-t)^2 and |x-t|."""
    i = pl.program_id(1)

    @pl.when(i == 0)
    def _():
        sq_ref[...] = jnp.zeros_like(sq_ref)
        abs_ref[...] = jnp.zeros_like(abs_ref)

    d = x_ref[...].astype(jnp.float32) - t_ref[...].astype(jnp.float32)
    # Tile-aligned (block_rows,128) -> (block_rows//8, 8, 128); summing the
    # leading axis is pure vreg-wise VALU adds (no cross-lane work, no big
    # accumulator traffic).
    sq_ref[...] += jnp.sum((d * d).reshape(-1, SUBLANES, LANES), axis=0)
    abs_ref[...] += jnp.sum(jnp.abs(d).reshape(-1, SUBLANES, LANES), axis=0)


def _sums_jnp(x, t):
    """Plain-jnp (sum_sq, sum_abs) for the small remainder slice."""
    d = x.astype(jnp.float32) - t.astype(jnp.float32)
    return jnp.sum(d * d), jnp.sum(jnp.abs(d))


def multi_loss(inputs, targets):
    """Pallas equivalent of MultiLoss.forward(inputs, targets)."""
    assert inputs.shape == targets.shape
    n = inputs.size
    flat_x = inputs.reshape(-1)
    flat_t = targets.reshape(-1)

    rows = n // LANES
    # Largest multiple of 8 rows up to MAX_BLOCK_ROWS that fits the input.
    block_rows = min(MAX_BLOCK_ROWS, (rows // SUBLANES) * SUBLANES)

    if block_rows == 0:
        # Fewer than one (8,128) tile of data: nothing for the kernel to do.
        sum_sq, sum_abs = _sums_jnp(flat_x, flat_t)
    else:
        num_blocks = rows // block_rows
        num_splits = NUM_SPLITS if num_blocks >= NUM_SPLITS else 1
        blocks_per_split = num_blocks // num_splits
        main_rows = num_splits * blocks_per_split * block_rows
        main_elems = main_rows * LANES

        aligned = rows * LANES
        if aligned == n:
            # Pure bitcast reshape: zero extra HBM traffic.
            x2d = flat_x.reshape(rows, LANES)
            t2d = flat_t.reshape(rows, LANES)
        else:
            # TODO(synk): XLA materializes this aligned prefix (one extra copy
            # of the main slab on unaligned inputs); a fully copy-free path
            # would need a 1-D manual-DMA kernel.
            x2d = flat_x[:aligned].reshape(rows, LANES)
            t2d = flat_t[:aligned].reshape(rows, LANES)

        in_map = lambda c, i: (c * blocks_per_split + i, 0)
        out_map = lambda c, i: (c, 0, 0)

        psq, pabs = pl.pallas_call(
            _partial_sums_kernel,
            out_shape=(
                jax.ShapeDtypeStruct((num_splits, SUBLANES, LANES), jnp.float32),
                jax.ShapeDtypeStruct((num_splits, SUBLANES, LANES), jnp.float32),
            ),
            grid_spec=pltpu.PrefetchScalarGridSpec(
                num_scalar_prefetch=0,
                grid=(num_splits, blocks_per_split),
                in_specs=[
                    pl.BlockSpec((block_rows, LANES), in_map),
                    pl.BlockSpec((block_rows, LANES), in_map),
                ],
                out_specs=(
                    pl.BlockSpec((None, SUBLANES, LANES), out_map),
                    pl.BlockSpec((None, SUBLANES, LANES), out_map),
                ),
            ),
            compiler_params=pltpu.CompilerParams(
                dimension_semantics=("parallel", "arbitrary"),
                vmem_limit_bytes=32 * 1024 * 1024,
            ),
        )(x2d, t2d)

        sum_sq = jnp.sum(psq)
        sum_abs = jnp.sum(pabs)

        if main_elems < n:
            # Leftover rows + lane tail (< 2*block_rows*128 elements): tiny
            # plain-jnp reduction read directly from the original array.
            tsq, tabs = _sums_jnp(flat_x[main_elems:], flat_t[main_elems:])
            sum_sq = sum_sq + tsq
            sum_abs = sum_abs + tabs

    # (w0 * sum_sq/n + w1 * sum_abs/n) / NUM_LOSSES
    inv = 1.0 / (n * NUM_LOSSES)
    return (LOSS_WEIGHTS[0] * sum_sq + LOSS_WEIGHTS[1] * sum_abs) * inv


def multi_loss_ref(inputs, targets):
    """Pure-JAX reference of the same MultiLoss configuration."""
    d = inputs.astype(jnp.float32) - targets.astype(jnp.float32)
    mse = jnp.mean(d * d)
    mae = jnp.mean(jnp.abs(d))
    return (LOSS_WEIGHTS[0] * mse + LOSS_WEIGHTS[1] * mae) / NUM_LOSSES


if __name__ == "__main__":
    key = jax.random.PRNGKey(0)
    k1, k2 = jax.random.split(key)

    # Small NCHW shapes consistent with a conv-style pipeline (lane-aligned).
    x = jax.random.normal(k1, (2, 4, 16, 16), dtype=jnp.float32)
    t = jax.random.normal(k2, (2, 4, 16, 16), dtype=jnp.float32)
    loss = jax.block_until_ready(multi_loss(x, t))
    ref = jax.block_until_ready(multi_loss_ref(x, t))
    assert jnp.allclose(loss, ref, rtol=1e-5, atol=1e-5), (loss, ref)

    # Unaligned bf16 path (lane tail + ragged rows handled in the wrapper).
    xb = jax.random.normal(k1, (3, 7, 61, 113), dtype=jnp.bfloat16)
    tb = jax.random.normal(k2, (3, 7, 61, 113), dtype=jnp.bfloat16)
    loss_b = jax.block_until_ready(multi_loss(xb, tb))
    ref_b = jax.block_until_ready(multi_loss_ref(xb, tb))
    assert jnp.allclose(loss_b, ref_b, rtol=2e-3, atol=2e-3), (loss_b, ref_b)

    # Multi-block path exercising the 2-way "parallel" split (grid = (2, 1)).
    xc = jax.random.normal(k1, (4, 32, 64, 64), dtype=jnp.bfloat16)
    tc = jax.random.normal(k2, (4, 32, 64, 64), dtype=jnp.bfloat16)
    loss_c = jax.block_until_ready(multi_loss(xc, tc))
    ref_c = jax.block_until_ready(multi_loss_ref(xc, tc))
    assert jnp.allclose(loss_c, ref_c, rtol=2e-3, atol=2e-3), (loss_c, ref_c)

    print("KERNEL_OK")
</pallas_src>

<mosaic_0001>
module attributes {stable_mosaic.version = 11 : i64} {
  func.func @_partial_sums_kernel(%arg0: i32, %arg1: i32, %arg2: memref<16x128xf32, #tpu.memory_space<vmem>>, %arg3: memref<16x128xf32, #tpu.memory_space<vmem>>, %arg4: memref<1x8x128xf32, #tpu.memory_space<vmem>>, %arg5: memref<1x8x128xf32, #tpu.memory_space<vmem>>) attributes {dimension_semantics = [#tpu.dimension_semantics<parallel>, #tpu.dimension_semantics<arbitrary>], iteration_bounds = array<i64: 1, 1>, scalar_prefetch = 0 : i64, scratch_operands = 0 : i64, tpu.core_type = #tpu.core_type<tc>, window_params = [{transform_indices = @transform_0, window_bounds = array<i64: 16, 128>}, {transform_indices = @transform_1, window_bounds = array<i64: 16, 128>}, {transform_indices = @transform_2, window_bounds = array<i64: 1, 8, 128>}, {transform_indices = @transform_3, window_bounds = array<i64: 1, 8, 128>}]} {
    %c0_i32 = arith.constant 0 : i32
    %0 = arith.cmpi eq, %arg1, %c0_i32 : i32
    %1 = arith.extui %0 : i1 to i32
    %c0_i32_0 = arith.constant 0 : i32
    %2 = arith.cmpi ne, %1, %c0_i32_0 : i32
    scf.if %2 {
      %cst_17 = arith.constant 0.000000e+00 : f32
      %24 = vector.broadcast %cst_17 : f32 to vector<8x128xf32>
      %c0_18 = arith.constant 0 : index
      %c0_19 = arith.constant 0 : index
      %c0_20 = arith.constant 0 : index
      %25 = vector.load %arg4[%c0_18, %c0_19, %c0_20] : memref<1x8x128xf32, #tpu.memory_space<vmem>>, vector<1x8x128xf32>
      %26 = vector.shape_cast %25 : vector<1x8x128xf32> to vector<8x128xf32>
      %27 = vector.shape_cast %24 : vector<8x128xf32> to vector<1x8x128xf32>
      tpu.vector_store %arg4[%c0_18, %c0_19, %c0_20], %27 {strides = array<i32>} : memref<1x8x128xf32, #tpu.memory_space<vmem>>, vector<1x8x128xf32>,
      %cst_21 = arith.constant 0.000000e+00 : f32
      %28 = vector.broadcast %cst_21 : f32 to vector<8x128xf32>
      %c0_22 = arith.constant 0 : index
      %c0_23 = arith.constant 0 : index
      %c0_24 = arith.constant 0 : index
      %29 = vector.load %arg5[%c0_22, %c0_23, %c0_24] : memref<1x8x128xf32, #tpu.memory_space<vmem>>, vector<1x8x128xf32>
      %30 = vector.shape_cast %29 : vector<1x8x128xf32> to vector<8x128xf32>
      %31 = vector.shape_cast %28 : vector<8x128xf32> to vector<1x8x128xf32>
      tpu.vector_store %arg5[%c0_22, %c0_23, %c0_24], %31 {strides = array<i32>} : memref<1x8x128xf32, #tpu.memory_space<vmem>>, vector<1x8x128xf32>,
    } else {
    }
    %c0 = arith.constant 0 : index
    %c0_1 = arith.constant 0 : index
    %3 = vector.load %arg2[%c0, %c0_1] : memref<16x128xf32, #tpu.memory_space<vmem>>, vector<16x128xf32>
    %c0_2 = arith.constant 0 : index
    %c0_3 = arith.constant 0 : index
    %4 = vector.load %arg3[%c0_2, %c0_3] : memref<16x128xf32, #tpu.memory_space<vmem>>, vector<16x128xf32>
    %5 = arith.subf %3, %4 : vector<16x128xf32>
    %c0_4 = arith.constant 0 : index
    %c0_5 = arith.constant 0 : index
    %c0_6 = arith.constant 0 : index
    %6 = vector.load %arg4[%c0_4, %c0_5, %c0_6] : memref<1x8x128xf32, #tpu.memory_space<vmem>>, vector<1x8x128xf32>
    %7 = vector.shape_cast %6 : vector<1x8x128xf32> to vector<8x128xf32>
    %8 = arith.mulf %5, %5 : vector<16x128xf32>
    %9 = vector.shape_cast %8 : vector<16x128xf32> to vector<2x8x128xf32>
    %cst = arith.constant dense<0.000000e+00> : vector<8x128xf32>
    %10 = vector.multi_reduction <add>, %9, %cst [0] : vector<2x8x128xf32> to vector<8x128xf32>
    %11 = arith.addf %7, %10 : vector<8x128xf32>
    %c0_7 = arith.constant 0 : index
    %c0_8 = arith.constant 0 : index
    %c0_9 = arith.constant 0 : index
    %12 = vector.load %arg4[%c0_7, %c0_8, %c0_9] : memref<1x8x128xf32, #tpu.memory_space<vmem>>, vector<1x8x128xf32>
    %13 = vector.shape_cast %12 : vector<1x8x128xf32> to vector<8x128xf32>
    %14 = vector.shape_cast %11 : vector<8x128xf32> to vector<1x8x128xf32>
    tpu.vector_store %arg4[%c0_7, %c0_8, %c0_9], %14 {strides = array<i32>} : memref<1x8x128xf32, #tpu.memory_space<vmem>>, vector<1x8x128xf32>,
    %c0_10 = arith.constant 0 : index
    %c0_11 = arith.constant 0 : index
    %c0_12 = arith.constant 0 : index
    %15 = vector.load %arg5[%c0_10, %c0_11, %c0_12] : memref<1x8x128xf32, #tpu.memory_space<vmem>>, vector<1x8x128xf32>
    %16 = vector.shape_cast %15 : vector<1x8x128xf32> to vector<8x128xf32>
    %17 = math.absf %5 : vector<16x128xf32>
    %18 = vector.shape_cast %17 : vector<16x128xf32> to vector<2x8x128xf32>
    %cst_13 = arith.constant dense<0.000000e+00> : vector<8x128xf32>
    %19 = vector.multi_reduction <add>, %18, %cst_13 [0] : vector<2x8x128xf32> to vector<8x128xf32>
    %20 = arith.addf %16, %19 : vector<8x128xf32>
    %c0_14 = arith.constant 0 : index
    %c0_15 = arith.constant 0 : index
    %c0_16 = arith.constant 0 : index
    %21 = vector.load %arg5[%c0_14, %c0_15, %c0_16] : memref<1x8x128xf32, #tpu.memory_space<vmem>>, vector<1x8x128xf32>
    %22 = vector.shape_cast %21 : vector<1x8x128xf32> to vector<8x128xf32>
    %23 = vector.shape_cast %20 : vector<8x128xf32> to vector<1x8x128xf32>
    tpu.vector_store %arg5[%c0_14, %c0_15, %c0_16], %23 {strides = array<i32>} : memref<1x8x128xf32, #tpu.memory_space<vmem>>, vector<1x8x128xf32>,
    return
  }
  func.func @transform_0(%arg0: i32, %arg1: i32) -> (i32, i32) {
    %c1_i32 = arith.constant 1 : i32
    %0 = arith.muli %arg0, %c1_i32 : i32
    %1 = arith.addi %0, %arg1 : i32
    %c0_i32 = arith.constant 0 : i32
    %c0_i32_0 = arith.constant 0 : i32
    return %1, %c0_i32 : i32, i32
  }
  func.func @transform_1(%arg0: i32, %arg1: i32) -> (i32, i32) {
    %c1_i32 = arith.constant 1 : i32
    %0 = arith.muli %arg0, %c1_i32 : i32
    %1 = arith.addi %0, %arg1 : i32
    %c0_i32 = arith.constant 0 : i32
    %c0_i32_0 = arith.constant 0 : i32
    return %1, %c0_i32 : i32, i32
  }
  func.func @transform_2(%arg0: i32, %arg1: i32) -> (i32, i32, i32) {
    %c0_i32 = arith.constant 0 : i32
    %c0_i32_0 = arith.constant 0 : i32
    %c0_i32_1 = arith.constant 0 : i32
    return %arg0, %c0_i32, %c0_i32_0 : i32, i32, i32
  }
  func.func @transform_3(%arg0: i32, %arg1: i32) -> (i32, i32, i32) {
    %c0_i32 = arith.constant 0 : i32
    %c0_i32_0 = arith.constant 0 : i32
    %c0_i32_1 = arith.constant 0 : i32
    return %arg0, %c0_i32, %c0_i32_0 : i32, i32, i32
  }
}

</mosaic_0001>

<bundles_post_ra>
// kernel: tpu_custom_call.1
= control target key start
LH: loop header
LB: loop body
LE: loop exit
PB: predicated region body
PF: predicated region fallthrough
CT: control target
= control target key end

     0   :  { %9 = vsyncpa [#allocation3], 0  ;;  %s286_s0 = inlined_call_operand.hbm [shape: f32[16,128], index: 0, kind: input, shape index: {}]   ;;  %s287_s1 = inlined_call_operand.hbm [shape: f32[16,128], index: 1, kind: input, shape index: {}]   ;;  %s288_s2 = inlined_call_operand.hbm [shape: f32[1,8,128], index: 2, kind: output, shape index: {0}]   ;;  %s289_s3 = inlined_call_operand.hbm [shape: f32[1,8,128], index: 3, kind: output, shape index: {1}]  }
   0x1   :  { %10 = vsyncpa [#allocation6], 0 }
   0x2   :  { %11 = vsyncpa [#allocation4], 0 }
   0x3   :  { %12 = vsyncpa [#allocation9], 0  ;;  %s212_s12 = smov [#allocation2]   ;;  %s116_s16 = scalar_lea.hbm %s286_s0, 256 }
   0x4   :  { %s22_s13 = sshll.u32 %s212_s12, 4  ;;  %p117_p0 = scmp.ne.s32.totalorder %s286_s0, %s116_s16  ;;  %s23_s13 = int_to_ptr.vmem [resolvable:$true] %s22_s13 }
   0x5   :  { %p120_p1 = scmp.lt.u32.totalorder %s116_s16, %s286_s0 }
   0x7   :  { %p122_p2 = pnand %p120_p1, %p117_p0 }
   0x9   :  { %125 = shalt.err (!%p122_p2)
}
   0xa   :  { %s126_s21 = scalar_lea.vmem %s23_s13, 256  ;;  %p131_p4 = scmp.lt.s32.totalorder %s23_s13, %s23_s13 }
   0xb   :  { %p127_p3 = scmp.ne.s32.totalorder %s23_s13, %s126_s21  ;;  %p132_p5 = scmp.lt.s32.totalorder %s126_s21, %s126_s21 }
   0xd   :  { %p133_p6 = por %p132_p5, %p131_p4 }
   0xf   :  { %p134_p7 = pnand %p133_p6, %p127_p3 }
  0x11   :  { %137 = shalt.err (!%p134_p7)
}
  0x12   :  { %s213_s22 = smov 128   ;;  %s214_s23 = smov 8  }
  0x13   :  { %28 = dma.hbm_to_vmem [thread:$0]  %s286_s0, 256, %s23_s13, [#allocation3], %s213_s22, %s213_s22, %s214_s23  }
  0x14   :  { %s215_s26 = smov [#allocation5]   ;;  %s138_s30 = scalar_lea.hbm %s287_s1, 256 }
  0x15   :  { %s38_s27 = sshll.u32 %s215_s26, 4  ;;  %p139_p8 = scmp.ne.s32.totalorder %s287_s1, %s138_s30  ;;  %s39_s27 = int_to_ptr.vmem [resolvable:$true] %s38_s27 }
  0x16   :  { %p142_p9 = scmp.lt.u32.totalorder %s138_s30, %s287_s1 }
  0x18   :  { %p144_p10 = pnand %p142_p9, %p139_p8 }
  0x1a   :  { %147 = shalt.err (!%p144_p10)
}
  0x1b   :  { %s148_s8 = scalar_lea.vmem %s39_s27, 256  ;;  %p153_p12 = scmp.lt.s32.totalorder %s39_s27, %s39_s27 }
  0x1c   :  { %p149_p11 = scmp.ne.s32.totalorder %s39_s27, %s148_s8  ;;  %p154_p13 = scmp.lt.s32.totalorder %s148_s8, %s148_s8 }
  0x1e   :  { %p155_p0 = por %p154_p13, %p153_p12 }
  0x20   :  { %p156_p1 = pnand %p155_p0, %p149_p11 }
  0x22   :  { %159 = shalt.err (!%p156_p1)
}
  0x23   :  { %44 = dma.hbm_to_vmem [thread:$0]  %s287_s1, 256, %s39_s27, [#allocation6], %s213_s22, %s213_s22, %s214_s23  }
  0x24   :  { %204 = dma.done.wait [#allocation3], 256  }
  0x25   :  { %205 = vsyncadd [#allocation3], 4294967040 }
  0x26   :  { %206 = dma.done.wait [#allocation6], 256  }
  0x27   :  { %207 = vsyncadd [#allocation6], 4294967040  ;;  %v61_v0 = vld [vmem:[#allocation2] sm:$0xff]  ;;  %v62_v1 = vld [vmem:[#allocation2 + $0x8] sm:$0xff]  ;;  %s216_s10 = smov [#allocation7]   ;;  %s217_s12 = smov [#allocation8]  }
  0x28   :  { %v63_v2 = vld [vmem:[#allocation5] sm:$0xff]  ;;  %v64_v3 = vld [vmem:[#allocation5 + $0x8] sm:$0xff]  ;;  %s85_s11 = sshll.u32 %s216_s10, 4  ;;  %s95_s1 = sshll.u32 %s217_s12, 4  ;;  %s86_s11 = int_to_ptr.vmem [resolvable:$true] %s85_s11  ;;  %s96_s1 = int_to_ptr.vmem [resolvable:$true] %s95_s1 }
  0x29   :  { %v65_v4 = vsub.f32 %v61_v0, %v63_v2  ;;  %v66_v5 = vsub.f32 %v62_v1, %v64_v3  ;;  %s160_s13 = scalar_lea.vmem %s86_s11, 128  ;;  %p165_p3 = scmp.lt.s32.totalorder %s86_s11, %s86_s11 }
  0x2a   :  { %p161_p2 = scmp.ne.s32.totalorder %s86_s11, %s160_s13  ;;  %p166_p4 = scmp.lt.s32.totalorder %s160_s13, %s160_s13 }
  0x2b   :  { %v68_v6 = vmul.f32 %v65_v4, %v65_v4  ;;  %v74_v7 = vand.u32 2147483647, %v65_v4  ;;  %v69_v8 = vmul.f32 %v66_v5, %v66_v5  ;;  %v75_v9 = vand.u32 2147483647, %v66_v5 }
  0x2c   :  { %p167_p5 = por %p166_p4, %p165_p3 }
  0x2d   :  { %v70_v10 = vadd.f32 %v69_v8, %v68_v6  ;;  %v76_v11 = vadd.f32 %v75_v9, %v74_v7 }
  0x2e   :  { %p168_p6 = pnand %p167_p5, %p161_p2 }
  0x2f   :  { %72 = vst [vmem:[#allocation7] sm:$0xff] %v70_v10  ;;  %78 = vst [vmem:[#allocation8] sm:$0xff] %v76_v11 }
  0x30   :  { %171 = shalt.err (!%p168_p6)
}
  0x31   :  { %s172_s16 = scalar_lea.hbm %s288_s2, 128 }
  0x32   :  { %p173_p7 = scmp.ne.s32.totalorder %s288_s2, %s172_s16  ;;  %p176_p8 = scmp.lt.u32.totalorder %s172_s16, %s288_s2 }
  0x34   :  { %p178_p9 = pnand %p176_p8, %p173_p7 }
  0x36   :  { %181 = shalt.err (!%p178_p9)
}
  0x37   :  { %88 = dma.vmem_to_hbm [thread:$0]  %s86_s11, 128, %s288_s2, [#allocation4]  }
  0x38   :  { %s182_s23 = scalar_lea.vmem %s96_s1, 128  ;;  %p187_p11 = scmp.lt.s32.totalorder %s96_s1, %s96_s1 }
  0x39   :  { %p183_p10 = scmp.ne.s32.totalorder %s96_s1, %s182_s23  ;;  %p188_p12 = scmp.lt.s32.totalorder %s182_s23, %s182_s23 }
  0x3b   :  { %p189_p13 = por %p188_p12, %p187_p11 }
  0x3d   :  { %p190_p0 = pnand %p189_p13, %p183_p10 }
  0x3f   :  { %193 = shalt.err (!%p190_p0)
}
  0x40   :  { %s194_s26 = scalar_lea.hbm %s289_s3, 128 }
  0x41   :  { %p195_p1 = scmp.ne.s32.totalorder %s289_s3, %s194_s26  ;;  %p198_p2 = scmp.lt.u32.totalorder %s194_s26, %s289_s3 }
  0x43   :  { %p200_p3 = pnand %p198_p2, %p195_p1 }
  0x45   :  { %203 = shalt.err (!%p200_p3)
}
  0x46   :  { %98 = dma.vmem_to_hbm [thread:$0]  %s96_s1, 128, %s289_s3, [#allocation9]  }
  0x47   :  { %208 = dma.done.wait [#allocation4], 128  }
  0x48   :  { %209 = vsyncadd [#allocation4], 4294967168 }
  0x49   :  { %210 = dma.done.wait [#allocation9], 128  }
  0x4a   :  { %211 = vsyncadd [#allocation9], 4294967168 }
  0x4b   :  { %105 = vsyncpa [#allocation3], 1 }
  0x4c   :  { %106 = vsyncpa [#allocation6], 1 }
  0x4d   :  { %107 = vsyncpa [#allocation4], 1 }
  0x4e   :  { %108 = vsyncpa [#allocation9], 1 }

</bundles_post_ra>
